<compile_context>
chip_gen: v5e
topology: v5e:2x2
jax: 0.10.0
libtpu: 0.0.40
codegen_flags: <defaults>
</compile_context>

<pallas_src>
import jax
import jax.numpy as jnp
from jax.experimental import pallas as pl
from jax.experimental.pallas import tpu as pltpu


def _mlp_kernel(x_ref, w1_ref, b1_ref, w2_ref, b2_ref, o_ref):
    # hidden = relu(x @ W1 + b1)   -- bf16 operands, f32 accumulation/epilogue
    h = jnp.dot(x_ref[...], w1_ref[...], preferred_element_type=jnp.float32)
    h = jnp.maximum(h + b1_ref[...], 0.0)          # b1 is (1, Hp) f32, broadcasts
    # out = h @ W2 + b2  (f32 accumulator downcast to bf16 for the second MXU pass)
    y = jnp.dot(h.astype(w2_ref.dtype), w2_ref[...],
                preferred_element_type=jnp.float32)
    o_ref[...] = (y + b2_ref[...]).astype(o_ref.dtype)


def _round_up(x, m):
    return ((x + m - 1) // m) * m


def _pad2(a, rows, cols):
    return jnp.pad(a, ((0, rows - a.shape[0]), (0, cols - a.shape[1])))


def neural_net_forward(x, w1, b1, w2, b2, *, block_b=512):
    """x: [B, n_feature]; w1: [n_feature, n_hidden]; b1: [n_hidden] or [1, n_hidden];
    w2: [n_hidden, n_output]; b2: [n_output] or [1, n_output]."""
    B, F = x.shape
    H = w1.shape[1]
    O = w2.shape[1]

    # Lane-dense padding of hidden/output dims; batch tile multiple of 16 (bf16
    # sublane packing).  Feature dim stays at its full (small) extent.
    Hp = _round_up(H, 128)
    Op = _round_up(O, 128)
    TB = min(block_b, _round_up(B, 16))
    Bp = _round_up(B, TB)
    grid = (Bp // TB,)

    x_p = _pad2(x, Bp, F).astype(jnp.bfloat16)
    w1_p = _pad2(w1, F, Hp).astype(jnp.bfloat16)
    b1_p = _pad2(jnp.reshape(b1, (1, -1)), 1, Hp).astype(jnp.float32)
    w2_p = _pad2(w2, Hp, Op).astype(jnp.bfloat16)
    b2_p = _pad2(jnp.reshape(b2, (1, -1)), 1, Op).astype(jnp.float32)

    out_p = pl.pallas_call(
        _mlp_kernel,
        out_shape=jax.ShapeDtypeStruct((Bp, Op), jnp.float32),
        grid=grid,
        in_specs=[
            pl.BlockSpec((TB, F), lambda i: (i, 0)),    # x: tiled over batch
            pl.BlockSpec((F, Hp), lambda i: (0, 0)),    # W1: VMEM-resident
            pl.BlockSpec((1, Hp), lambda i: (0, 0)),    # b1: VMEM-resident
            pl.BlockSpec((Hp, Op), lambda i: (0, 0)),   # W2: VMEM-resident
            pl.BlockSpec((1, Op), lambda i: (0, 0)),    # b2: VMEM-resident
        ],
        out_specs=pl.BlockSpec((TB, Op), lambda i: (i, 0)),
        compiler_params=pltpu.CompilerParams(
            dimension_semantics=("parallel",),
            vmem_limit_bytes=48 * 1024 * 1024,
        ),
    )(x_p, w1_p, b1_p, w2_p, b2_p)

    return out_p[:B, :O].astype(x.dtype)


def init_params(key, n_feature, n_hidden, n_output, dtype=jnp.float32):
    """Deterministic init mimicking torch.nn.Linear default (U[-1/sqrt(in), 1/sqrt(in)]).
    Weights are stored transposed ([in, out]) relative to PyTorch's [out, in]."""
    k1, k2, k3, k4 = jax.random.split(key, 4)
    lim1 = 1.0 / jnp.sqrt(jnp.float32(n_feature))
    lim2 = 1.0 / jnp.sqrt(jnp.float32(n_hidden))
    w1 = jax.random.uniform(k1, (n_feature, n_hidden), dtype, -lim1, lim1)
    b1 = jax.random.uniform(k2, (1, n_hidden), dtype, -lim1, lim1)
    w2 = jax.random.uniform(k3, (n_hidden, n_output), dtype, -lim2, lim2)
    b2 = jax.random.uniform(k4, (1, n_output), dtype, -lim2, lim2)
    return w1, b1, w2, b2


if __name__ == "__main__":
    n_feature, n_hidden, n_output = 8, 32, 4
    batch = 8

    key = jax.random.PRNGKey(0)
    kx, kp = jax.random.split(key)
    x = jax.random.normal(kx, (batch, n_feature), jnp.float32)
    w1, b1, w2, b2 = init_params(kp, n_feature, n_hidden, n_output)

    out = neural_net_forward(x, w1, b1, w2, b2)
    out = jax.block_until_ready(out)
    assert out.shape == (batch, n_output)

    # Reference mimicking the kernel's numerics (bf16 matmul operands, f32 accumulate).
    xb = x.astype(jnp.bfloat16)
    w1b = w1.astype(jnp.bfloat16)
    w2b = w2.astype(jnp.bfloat16)
    h_ref = jnp.maximum(
        jnp.dot(xb, w1b, preferred_element_type=jnp.float32) + b1, 0.0
    ).astype(jnp.bfloat16)
    ref = jnp.dot(h_ref, w2b, preferred_element_type=jnp.float32) + b2
    assert jnp.allclose(out, ref, atol=1e-3, rtol=1e-3)

    # Loose sanity check against the pure-f32 forward (bf16 rounding only).
    ref_f32 = jnp.maximum(x @ w1 + b1, 0.0) @ w2 + b2
    assert jnp.allclose(out, ref_f32, atol=5e-2, rtol=5e-2)

    print("KERNEL_OK")
</pallas_src>

<mosaic_0001>
module attributes {stable_mosaic.version = 11 : i64} {
  func.func @_mlp_kernel(%arg0: i32, %arg1: memref<16x8xbf16, #tpu.memory_space<vmem>>, %arg2: memref<8x128xbf16, #tpu.memory_space<vmem>>, %arg3: memref<1x128xf32, #tpu.memory_space<vmem>>, %arg4: memref<128x128xbf16, #tpu.memory_space<vmem>>, %arg5: memref<1x128xf32, #tpu.memory_space<vmem>>, %arg6: memref<16x128xf32, #tpu.memory_space<vmem>>) attributes {dimension_semantics = [#tpu.dimension_semantics<parallel>], iteration_bounds = array<i64: 1>, scalar_prefetch = 0 : i64, scratch_operands = 0 : i64, tpu.core_type = #tpu.core_type<tc>, window_params = [{transform_indices = @transform_0, window_bounds = array<i64: 16, 8>}, {pipeline_mode = #tpu.pipeline_mode<synchronous>, transform_indices = @transform_1, window_bounds = array<i64: 8, 128>}, {pipeline_mode = #tpu.pipeline_mode<synchronous>, transform_indices = @transform_2, window_bounds = array<i64: 1, 128>}, {pipeline_mode = #tpu.pipeline_mode<synchronous>, transform_indices = @transform_3, window_bounds = array<i64: 128, 128>}, {pipeline_mode = #tpu.pipeline_mode<synchronous>, transform_indices = @transform_4, window_bounds = array<i64: 1, 128>}, {transform_indices = @transform_5, window_bounds = array<i64: 16, 128>}]} {
    %c0 = arith.constant 0 : index
    %c0_0 = arith.constant 0 : index
    %0 = vector.load %arg1[%c0, %c0_0] : memref<16x8xbf16, #tpu.memory_space<vmem>>, vector<16x8xbf16>
    %c0_1 = arith.constant 0 : index
    %c0_2 = arith.constant 0 : index
    %1 = vector.load %arg2[%c0_1, %c0_2] : memref<8x128xbf16, #tpu.memory_space<vmem>>, vector<8x128xbf16>
    %cst = arith.constant dense<0.000000e+00> : vector<16x128xf32>
    %2 = tpu.matmul %0, %1, %cst {dimension_numbers = #tpu.dot_dimension_numbers<[1], [0], [0], [1], [0, 0, 1, 1], [], []>} : vector<16x8xbf16>, vector<8x128xbf16>, vector<16x128xf32> -> vector<16x128xf32>
    %c0_3 = arith.constant 0 : index
    %c0_4 = arith.constant 0 : index
    %3 = vector.load %arg3[%c0_3, %c0_4] : memref<1x128xf32, #tpu.memory_space<vmem>>, vector<1x128xf32>
    %4 = vector.broadcast %3 : vector<1x128xf32> to vector<16x128xf32>
    %5 = arith.addf %2, %4 : vector<16x128xf32>
    %cst_5 = arith.constant 0.000000e+00 : f32
    %6 = vector.broadcast %cst_5 : f32 to vector<16x128xf32>
    %7 = arith.maximumf %5, %6 : vector<16x128xf32>
    %8 = arith.truncf %7 : vector<16x128xf32> to vector<16x128xbf16>
    %c0_6 = arith.constant 0 : index
    %c0_7 = arith.constant 0 : index
    %9 = vector.load %arg4[%c0_6, %c0_7] : memref<128x128xbf16, #tpu.memory_space<vmem>>, vector<128x128xbf16>
    %cst_8 = arith.constant dense<0.000000e+00> : vector<16x128xf32>
    %10 = tpu.matmul %8, %9, %cst_8 {dimension_numbers = #tpu.dot_dimension_numbers<[1], [0], [0], [1], [0, 0, 1, 1], [], []>} : vector<16x128xbf16>, vector<128x128xbf16>, vector<16x128xf32> -> vector<16x128xf32>
    %c0_9 = arith.constant 0 : index
    %c0_10 = arith.constant 0 : index
    %11 = vector.load %arg5[%c0_9, %c0_10] : memref<1x128xf32, #tpu.memory_space<vmem>>, vector<1x128xf32>
    %12 = vector.broadcast %11 : vector<1x128xf32> to vector<16x128xf32>
    %13 = arith.addf %10, %12 : vector<16x128xf32>
    %c0_11 = arith.constant 0 : index
    %c0_12 = arith.constant 0 : index
    %14 = vector.load %arg6[%c0_11, %c0_12] : memref<16x128xf32, #tpu.memory_space<vmem>>, vector<16x128xf32>
    tpu.vector_store %arg6[%c0_11, %c0_12], %13 {strides = array<i32>} : memref<16x128xf32, #tpu.memory_space<vmem>>, vector<16x128xf32>,
    return
  }
  func.func @transform_0(%arg0: i32) -> (i32, i32) {
    %c0_i32 = arith.constant 0 : i32
    %c0_i32_0 = arith.constant 0 : i32
    return %arg0, %c0_i32 : i32, i32
  }
  func.func @transform_1(%arg0: i32) -> (i32, i32) {
    %c0_i32 = arith.constant 0 : i32
    %c0_i32_0 = arith.constant 0 : i32
    %c0_i32_1 = arith.constant 0 : i32
    return %c0_i32, %c0_i32_0 : i32, i32
  }
  func.func @transform_2(%arg0: i32) -> (i32, i32) {
    %c0_i32 = arith.constant 0 : i32
    %c0_i32_0 = arith.constant 0 : i32
    %c0_i32_1 = arith.constant 0 : i32
    return %c0_i32, %c0_i32_0 : i32, i32
  }
  func.func @transform_3(%arg0: i32) -> (i32, i32) {
    %c0_i32 = arith.constant 0 : i32
    %c0_i32_0 = arith.constant 0 : i32
    %c0_i32_1 = arith.constant 0 : i32
    return %c0_i32, %c0_i32_0 : i32, i32
  }
  func.func @transform_4(%arg0: i32) -> (i32, i32) {
    %c0_i32 = arith.constant 0 : i32
    %c0_i32_0 = arith.constant 0 : i32
    %c0_i32_1 = arith.constant 0 : i32
    return %c0_i32, %c0_i32_0 : i32, i32
  }
  func.func @transform_5(%arg0: i32) -> (i32, i32) {
    %c0_i32 = arith.constant 0 : i32
    %c0_i32_0 = arith.constant 0 : i32
    return %arg0, %c0_i32 : i32, i32
  }
}

</mosaic_0001>

<bundles_post_ra>
// kernel: tpu_custom_call.1
= control target key start
LH: loop header
LB: loop body
LE: loop exit
PB: predicated region body
PF: predicated region fallthrough
CT: control target
= control target key end

     0   :  { %10 = vsyncpa [#allocation3], 0  ;;  %s338_s0 = inlined_call_operand.vmem [shape: bf16[16,8], index: 0, kind: input, shape index: {}]   ;;  %s339_s1 = inlined_call_operand.vmem [shape: bf16[8,128], index: 1, kind: input, shape index: {}]   ;;  %s340_s2 = inlined_call_operand.vmem [shape: f32[1,128], index: 2, kind: input, shape index: {}]   ;;  %s341_s3 = inlined_call_operand.hbm [shape: bf16[128,128], index: 3, kind: input, shape index: {}]   ;;  %s342_s4 = inlined_call_operand.vmem [shape: f32[1,128], index: 4, kind: input, shape index: {}]   ;;  %s343_s5 = inlined_call_operand.hbm [shape: f32[16,128], index: 5, kind: output, shape index: {}]  }
   0x1   :  { %11 = vsyncpa [#allocation4], 0  ;;  %s22_s20 = sshll.u32 %s341_s3, 4  ;;  %s284_s21 = smov [#allocation2]   ;;  %s23_s20 = int_to_ptr.hbm [resolvable:$true] %s22_s20 }
   0x2   :  { %s24_s22 = sshll.u32 %s284_s21, 4  ;;  %s285_s23 = smov 64   ;;  %s25_s22 = int_to_ptr.vmem [resolvable:$true] %s24_s22 }
   0x3   :  { %s286_s24 = smov 4  }
   0x4   :  { %30 = dma.hbm_to_vmem [thread:$0]  %s23_s20, 1024, %s25_s22, [#allocation3], %s285_s23, %s285_s23, %s286_s24  }
   0x5   :  { %280 = dma.done.wait [#allocation3], 1024  }
   0x6   :  { %281 = vsyncadd [#allocation3], 4294966272  ;;  %vm54_vm0 = vcmask 1043456   ;;  %v40_v0 = vld [vmem:[%s339_s1] sm:$0xf]  ;;  %v223_v1 = vld [vmem:[#allocation2 + $0x38] sm:$0xff] }
   0x7   :  { %v56_v2 = vsel %vm54_vm0, %v40_v0, 0  ;;  %v215_v3 = vld [vmem:[%s338_s0] sm:$0xff]  ;;  %vm50_vm1 = vcmask 64512   ;;  %143 = vmatpush.bf16.msra.mxu1 %v223_v1  ;;  %v222_v4 = vld [vmem:[#allocation2 + $0x30] sm:$0xff]  ;;  %v221_v5 = vld [vmem:[#allocation2 + $0x28] sm:$0xff]  ;;  %s287_s30 = smov [#allocation5]  }
   0x8   :  { %65 = vmatpush.bf16.msra.mxu0 %v56_v2  ;;  %v220_v6 = vld [vmem:[#allocation2 + $0x20] sm:$0xff]  ;;  %v219_v7 = vld [vmem:[#allocation2 + $0x18] sm:$0xff]  ;;  %v218_v8 = vld [vmem:[#allocation2 + $0x10] sm:$0xff]  ;;  %s163_s6 = sshll.u32 %s287_s30, 4  ;;  %s288_s9 = smov 128   ;;  %s164_s6 = int_to_ptr.vmem [resolvable:$true] %s163_s6 }
   0x9   :  { %v217_v9 = vld [vmem:[#allocation2 + $0x8] sm:$0xff]  ;;  %v216_v10 = vld [vmem:[#allocation2] sm:$0xff]  ;;  %s289_s10 = smov 8  }
   0xa   :  { %v230_v12 = vld [vmem:[%s340_s2] ss:$0 sm:$0xff]  ;;  %s165_s2 = sshll.u32 %s343_s5, 4  ;;  %s166_s2 = int_to_ptr.hbm [resolvable:$true] %s165_s2 }
   0xb   :  { %182 = vmatmul.msk.bf16.vlgmr.msra.gmra.mxu0 %vm50_vm1, %v215_v3  ;;  %144 = vmatpush.bf16.msra.mxu1 %v222_v4  ;;  %v231_v19 = vld [vmem:[%s342_s4] ss:$0 sm:$0xff] }
   0xf   :  { %145 = vmatpush.bf16.msra.mxu1 %v221_v5 }
  0x13   :  { %146 = vmatpush.bf16.msra.mxu1 %v220_v6 }
  0x17   :  { %147 = vmatpush.bf16.msra.mxu1 %v219_v7 }
  0x1b   :  { %148 = vmatpush.bf16.msra.mxu1 %v218_v8 }
  0x1f   :  { %149 = vmatpush.bf16.msra.mxu1 %v217_v9 }
  0x23   :  { %150 = vmatpush.bf16.msra.mxu1 %v216_v10 }
  0x88   :  { %v67_v11 = vpop.f32.mrf.mxu0 }
  0x89   :  { %v68_v13 = vadd.f32 %v230_v12, %v67_v11 }
  0x8b   :  { %v72_v16 = vmax.f32 %v68_v13, 0.0 }
  0x90   :  { %v69_v14 = vpop.f32.mrf.mxu0 }
  0x91   :  { %v70_v15 = vadd.f32 %v230_v12, %v69_v14 }
  0x93   :  { %v73_v17 = vmax.f32 %v70_v15, 0.0 }
  0x95   :  { %v74_v18 = vpack.c.bf16 %v73_v17, %v72_v16 }
  0x97   :  { %151 = vmatmul.bf16.vlgmr.msra.gmra.mxu1 %v74_v18 }
 0x114   :  { %v152_v20 = vpop.f32.mrf.mxu1 }
 0x115   :  { %v153_v21 = vadd.f32 %v231_v19, %v152_v20 }
 0x117   :  { %157 = vst [vmem:[#allocation5] sm:$0xff] %v153_v21 }
 0x11c   :  { %v154_v22 = vpop.f32.mrf.mxu1 }
 0x11d   :  { %v155_v23 = vadd.f32 %v231_v19, %v154_v22 }
 0x11f   :  { %158 = vst [vmem:[#allocation5 + $0x8] sm:$0xff] %v155_v23 }
 0x120   :  { %171 = dma.vmem_to_hbm [thread:$0]  %s164_s6, 256, %s166_s2, [#allocation4], %s288_s9, %s288_s9, %s289_s10  }
 0x121   :  { %282 = dma.done.wait [#allocation4], 256  }
 0x122   :  { %283 = vsyncadd [#allocation4], 4294967040 }
 0x123   :  { %176 = vsyncpa [#allocation3], 1 }
 0x124   :  { %177 = vsyncpa [#allocation4], 1 }

</bundles_post_ra>
